<compile_context>
chip_gen: v5e
topology: v5e:2x2
jax: 0.10.0
libtpu: 0.0.40
codegen_flags: <defaults>
</compile_context>

<pallas_src>
import jax
import jax.numpy as jnp
from jax.experimental import pallas as pl
from jax.experimental.pallas import tpu as pltpu


# ----------------------------------------------------------------------------
# Fused GRL -> Conv1(1x1) -> ReLU -> Conv2(1x1), NCHW-native (the MXU work)
# ----------------------------------------------------------------------------
def _conv1x1_chain_kernel(x_ref, w1_ref, w2_ref, out_ref):
    """x_ref: [1, C, t] ; w1_ref: [512, C] ; w2_ref: [2, 512] ; out_ref: [1, 2, t]."""
    h = jnp.dot(w1_ref[...], x_ref[0], preferred_element_type=jnp.float32)
    h = jnp.maximum(h, 0.0)  # ReLU is applied after Conv1 only
    out_ref[0] = jnp.dot(
        w2_ref[...], h, preferred_element_type=jnp.float32
    ).astype(out_ref.dtype)


def image_da_conv(x, w1, w2):
    """1x1 conv chain of _ImageDA.  x: [B, C, H, W] -> [B, 2, H, W].

    w1: [512, C] (Conv1.weight[:, :, 0, 0]),  w2: [2, 512] (Conv2.weight[:, :, 0, 0]).
    grad_reverse is the identity in the forward pass, so it is a no-op here.
    """
    B, C, H, W = x.shape
    hidden = w1.shape[0]
    out_c = w2.shape[0]
    HW = H * W

    # Free reshape: NCHW -> [B, C, H*W].  No transposes anywhere.
    x_r = x.reshape(B, C, HW)

    # Lane-dense HW tile, VMEM-budgeted: double-buffered x + out blocks plus the
    # [hidden, tile] intermediate stay a few MiB (safe under every chip's
    # scoped-VMEM default, including v5e's 16 MiB).
    budget_bytes = 6 * 1024 * 1024
    t_cap = budget_bytes // (4 * (2 * C + 2 * out_c + hidden))
    t_cap = max(128, (t_cap // 128) * 128)
    hw128 = ((HW + 127) // 128) * 128
    tile = min(hw128, t_cap)                      # one step per batch for small planes
    hw_pad = ((HW + tile - 1) // tile) * tile
    if hw_pad != HW:
        x_r = jnp.pad(x_r, ((0, 0), (0, 0), (0, hw_pad - HW)))

    out = pl.pallas_call(
        _conv1x1_chain_kernel,
        out_shape=jax.ShapeDtypeStruct((B, out_c, hw_pad), x.dtype),
        grid_spec=pltpu.PrefetchScalarGridSpec(
            num_scalar_prefetch=0,
            grid=(B, hw_pad // tile),
            in_specs=[
                pl.BlockSpec((1, C, tile), lambda b, j: (b, 0, j)),       # pixel tile
                pl.BlockSpec((hidden, C), lambda b, j: (0, 0)),           # W1, resident
                pl.BlockSpec((out_c, hidden), lambda b, j: (0, 0)),       # W2, resident
            ],
            out_specs=pl.BlockSpec((1, out_c, tile), lambda b, j: (b, 0, j)),
        ),
        compiler_params=pltpu.CompilerParams(
            dimension_semantics=("parallel", "parallel")),
    )(x_r, w1, w2)

    # Free reshape back to NCHW (spatial dims preserved by 1x1 convs).
    return out[:, :, :HW].reshape(B, out_c, H, W)


# ----------------------------------------------------------------------------
# ImageLabelResizeLayer: broadcast each scalar label over its (H, W) plane
# ----------------------------------------------------------------------------
def _label_fill_kernel(lbl_ref, out_ref):
    """lbl_ref: VMEM int32 [nb, 1] ; out_ref: VMEM int32 [nb, tile] (lane-dense)."""
    # Bare splat + store: the vst slot / output DMA is the only resource used.
    out_ref[...] = jnp.broadcast_to(lbl_ref[...], out_ref.shape)


def image_label_resize(x, need_backprop):
    """label[b, h, w] = int(need_backprop[b]), shape [nb, H, W], int32.

    nb = need_backprop.shape[0] (exactly what the PyTorch layer produces).
    .long() (int64) is emitted as int32 — documented deviation.
    """
    _, _, H, W = x.shape
    nb = need_backprop.shape[0]
    HW = H * W

    # float32 gt_blob fill followed by .long() == truncation toward zero.
    lbl = need_backprop.astype(jnp.float32).astype(jnp.int32).reshape(nb, 1)

    # Lane-dense layout: flatten (H, W) into the trailing dim.  Keep one
    # double-buffered int32 output block ~4 MiB; typical planes -> 1 grid step.
    budget_elems = max(128, (4 * 1024 * 1024) // (4 * nb))
    tile_cap = (budget_elems // 128) * 128
    hw128 = ((HW + 127) // 128) * 128
    tile = min(hw128, tile_cap)
    hw_pad = ((HW + tile - 1) // tile) * tile

    y_flat = pl.pallas_call(
        _label_fill_kernel,
        out_shape=jax.ShapeDtypeStruct((nb, hw_pad), jnp.int32),
        grid_spec=pltpu.PrefetchScalarGridSpec(
            num_scalar_prefetch=0,
            grid=(hw_pad // tile,),                          # 1 step for small planes
            in_specs=[pl.BlockSpec((nb, 1), lambda t: (0, 0))],   # labels stay resident
            out_specs=pl.BlockSpec((nb, tile), lambda t: (0, t)),
        ),
        compiler_params=pltpu.CompilerParams(
            dimension_semantics=("parallel",)),              # independent plane tiles
    )(lbl)

    return y_flat[:, :HW].reshape(nb, H, W)


# ----------------------------------------------------------------------------
# Full _ImageDA forward
# ----------------------------------------------------------------------------
def image_da_forward(x, w1, w2, need_backprop):
    """Returns (features [B, 2, H, W], label [nb, H, W] int32)."""
    # grad_reverse: identity in forward.  (GRL backward grad*(-0.1) is a
    # training-time autodiff rule, not part of the forward pass.)
    feat = image_da_conv(x, w1, w2)
    # The label layer only reads H, W of the conv output; 1x1 convs preserve
    # spatial dims, so using x's H, W is equivalent.
    label = image_label_resize(x, need_backprop)
    return feat, label


if __name__ == "__main__":
    key = jax.random.PRNGKey(0)
    kx, kl, kw1, kw2 = jax.random.split(key, 4)

    B, C, H, W = 2, 4, 16, 16
    HIDDEN, OUT_C = 512, 2

    x = jax.random.normal(kx, (B, C, H, W), dtype=jnp.float32)
    need_backprop = jax.random.randint(kl, (B,), 0, 2).astype(jnp.float32)
    w1 = 0.05 * jax.random.normal(kw1, (HIDDEN, C), dtype=jnp.float32)      # Conv1 weight (no bias)
    w2 = 0.05 * jax.random.normal(kw2, (OUT_C, HIDDEN), dtype=jnp.float32)  # Conv2 weight (no bias)

    feat, label = image_da_forward(x, w1, w2, need_backprop)
    feat = jax.block_until_ready(feat)
    label = jax.block_until_ready(label)

    # Pure-JAX reference.
    x_nhwc = jnp.transpose(x, (0, 2, 3, 1))
    h_ref = jnp.maximum(
        jnp.einsum("bhwc,oc->bhwo", x_nhwc, w1, precision=jax.lax.Precision.HIGHEST), 0.0)
    feat_ref = jnp.transpose(
        jnp.einsum("bhwo,ko->bhwk", h_ref, w2, precision=jax.lax.Precision.HIGHEST),
        (0, 3, 1, 2))
    label_ref = jnp.broadcast_to(
        need_backprop.astype(jnp.int32)[:, None, None], (B, H, W))

    assert feat.shape == (B, OUT_C, H, W), feat.shape
    assert label.shape == (B, H, W), label.shape
    assert label.dtype == jnp.int32, label.dtype
    assert bool(jnp.allclose(feat, feat_ref, atol=5e-3, rtol=1e-2)), float(
        jnp.max(jnp.abs(feat - feat_ref)))
    assert bool(jnp.all(label == label_ref)), "label mismatch vs reference"

    print("KERNEL_OK")
</pallas_src>

<mosaic_0001>
module attributes {stable_mosaic.version = 11 : i64} {
  func.func @_conv1x1_chain_kernel(%arg0: i32, %arg1: i32, %arg2: memref<1x4x256xf32, #tpu.memory_space<vmem>>, %arg3: memref<512x4xf32, #tpu.memory_space<vmem>>, %arg4: memref<2x512xf32, #tpu.memory_space<vmem>>, %arg5: memref<1x2x256xf32, #tpu.memory_space<vmem>>) attributes {dimension_semantics = [#tpu.dimension_semantics<parallel>, #tpu.dimension_semantics<parallel>], iteration_bounds = array<i64: 2, 1>, scalar_prefetch = 0 : i64, scratch_operands = 0 : i64, tpu.core_type = #tpu.core_type<tc>, window_params = [{transform_indices = @transform_0, window_bounds = array<i64: 1, 4, 256>}, {pipeline_mode = #tpu.pipeline_mode<synchronous>, transform_indices = @transform_1, window_bounds = array<i64: 512, 4>}, {pipeline_mode = #tpu.pipeline_mode<synchronous>, transform_indices = @transform_2, window_bounds = array<i64: 2, 512>}, {transform_indices = @transform_3, window_bounds = array<i64: 1, 2, 256>}]} {
    %c0 = arith.constant 0 : index
    %c0_0 = arith.constant 0 : index
    %0 = vector.load %arg3[%c0, %c0_0] : memref<512x4xf32, #tpu.memory_space<vmem>>, vector<512x4xf32>
    %c0_1 = arith.constant 0 : index
    %c0_2 = arith.constant 0 : index
    %c0_3 = arith.constant 0 : index
    %1 = vector.load %arg2[%c0_1, %c0_2, %c0_3] : memref<1x4x256xf32, #tpu.memory_space<vmem>>, vector<1x4x256xf32>
    %2 = vector.shape_cast %1 : vector<1x4x256xf32> to vector<4x256xf32>
    %cst = arith.constant dense<0.000000e+00> : vector<512x256xf32>
    %3 = tpu.matmul %0, %2, %cst {dimension_numbers = #tpu.dot_dimension_numbers<[1], [0], [0], [1], [0, 0, 1, 1], [], []>} : vector<512x4xf32>, vector<4x256xf32>, vector<512x256xf32> -> vector<512x256xf32>
    %cst_4 = arith.constant 0.000000e+00 : f32
    %4 = vector.broadcast %cst_4 : f32 to vector<512x256xf32>
    %5 = arith.maximumf %3, %4 : vector<512x256xf32>
    %c0_5 = arith.constant 0 : index
    %c0_6 = arith.constant 0 : index
    %6 = vector.load %arg4[%c0_5, %c0_6] : memref<2x512xf32, #tpu.memory_space<vmem>>, vector<2x512xf32>
    %cst_7 = arith.constant dense<0.000000e+00> : vector<2x256xf32>
    %7 = tpu.matmul %6, %5, %cst_7 {dimension_numbers = #tpu.dot_dimension_numbers<[1], [0], [0], [1], [0, 0, 1, 1], [], []>} : vector<2x512xf32>, vector<512x256xf32>, vector<2x256xf32> -> vector<2x256xf32>
    %c0_8 = arith.constant 0 : index
    %c0_9 = arith.constant 0 : index
    %c0_10 = arith.constant 0 : index
    %8 = vector.load %arg5[%c0_8, %c0_9, %c0_10] : memref<1x2x256xf32, #tpu.memory_space<vmem>>, vector<1x2x256xf32>
    %9 = vector.shape_cast %8 : vector<1x2x256xf32> to vector<2x256xf32>
    %10 = vector.shape_cast %7 : vector<2x256xf32> to vector<1x2x256xf32>
    tpu.vector_store %arg5[%c0_8, %c0_9, %c0_10], %10 {strides = array<i32>} : memref<1x2x256xf32, #tpu.memory_space<vmem>>, vector<1x2x256xf32>,
    return
  }
  func.func @transform_0(%arg0: i32, %arg1: i32) -> (i32, i32, i32) {
    %c0_i32 = arith.constant 0 : i32
    %c0_i32_0 = arith.constant 0 : i32
    return %arg0, %c0_i32, %arg1 : i32, i32, i32
  }
  func.func @transform_1(%arg0: i32, %arg1: i32) -> (i32, i32) {
    %c0_i32 = arith.constant 0 : i32
    %c0_i32_0 = arith.constant 0 : i32
    %c0_i32_1 = arith.constant 0 : i32
    return %c0_i32, %c0_i32_0 : i32, i32
  }
  func.func @transform_2(%arg0: i32, %arg1: i32) -> (i32, i32) {
    %c0_i32 = arith.constant 0 : i32
    %c0_i32_0 = arith.constant 0 : i32
    %c0_i32_1 = arith.constant 0 : i32
    return %c0_i32, %c0_i32_0 : i32, i32
  }
  func.func @transform_3(%arg0: i32, %arg1: i32) -> (i32, i32, i32) {
    %c0_i32 = arith.constant 0 : i32
    %c0_i32_0 = arith.constant 0 : i32
    return %arg0, %c0_i32, %arg1 : i32, i32, i32
  }
}

</mosaic_0001>

<bundles_post_ra>
// kernel: tpu_custom_call.1
= control target key start
LH: loop header
LB: loop body
LE: loop exit
PB: predicated region body
PF: predicated region fallthrough
CT: control target
= control target key end

     0   :  { %8 = vsyncpa [#allocation3], 0  ;;  %s2378_s0 = inlined_call_operand.vmem [shape: f32[2,4,256], index: 0, kind: input, shape index: {}]   ;;  %s2379_s1 = inlined_call_operand.vmem [shape: f32[512,4], index: 1, kind: input, shape index: {}]   ;;  %s2380_s2 = inlined_call_operand.vmem [shape: f32[2,512], index: 2, kind: input, shape index: {}]   ;;  %s2381_s3 = inlined_call_operand.hbm [shape: f32[2,2,256], index: 3, kind: output, shape index: {}]  }
   0x1   :  { %10 = vsyncpa [#allocation3 + $0x1], 0  ;;  %s1588_s12 = smov 0   ;;  %s1590_s13 = smov 0  }
   0x2   :  { %s1592_s14 = smov 0   ;;  %s1594_s15 = smov 0  }
   0x3   :  { %s1596_s16 = smov 0   ;;  %s1598_s17 = smov 0  }
   0x4 LB: > { %s1286_s18 = sadd.s32 4294967295, %s1566_s17   ;;  %s1287_s19 = sadd.s32 4294967294, %s1566_s17   ;;  %s1566_s17 = sphi %s1598_s17, %s16_s17   ;;  %s1562_s16 = sphi %s1596_s16, %s2424_s16   ;;  %s1558_s15 = sphi %s1594_s15, %s2423_s15   ;;  %s1554_s14 = sphi %s1592_s14, %s2422_s14   ;;  %s1550_s13 = sphi %s1590_s13, %s2421_s13   ;;  %s1546_s12 = sphi %s1588_s12, %s2420_s12  }
   0x5   : > { %s28_s20 = sadd.s32 1, %s1562_s16  ;;  %s107_s21 = sadd.s32 1, %s1554_s14 }
   0x6   : > { %p30_p0 = scmp.ge.s32.totalorder %s28_s20, 2  ;;  %p117_p1 = scmp.ne.s32.totalorder %s1554_s14, %s1550_s13 }
   0x7   : > { %p118_p2 = scmp.eq.s32.totalorder %s1286_s18, 1  ;;  %p123_p3 = scmp.ne.s32.totalorder %s1550_s13, %s1546_s12 }
   0x8   : > { %s2426_s20 = smov (%p30_p0, %s28_s20), 0  ;;  %p124_p5 = scmp.eq.s32.totalorder %s1287_s19, 1 }
   0x9   : > { %p1628_p4 = por %p118_p2, %p117_p1  ;;  %s102_s23 = ssub.s32 %s1562_s16, %s2426_s20 }
   0xa   : > { %p1290_p6 = scmp.ge.s32.totalorder %s1566_s17, 1  ;;  %p105_p7 = scmp.eq.s32.totalorder %s102_s23, 0 }
   0xb   : > { %p1635_p8 = por %p124_p5, %p123_p3  ;;  %p161_p9 = scmp.lt.s32.totalorder %s1566_s17, 3 }
   0xc   : > { %s1641_s25 = scalar_select %p105_p7, %s1554_s14, %s107_s21  }
   0xd   : > { %p162_p10 = pnand %p1290_p6, %p161_p9 }
   0xf   : > { %165 = sbr.rel (%p162_p10) target bundleno = 697 (0x2b9), region = 32 }
  0x14   : > { %p190_p11 = scmp.lt.s32.totalorder %s1558_s15, 1  ;;  %vm462_vm0 = vcmask 1043456   ;;  %v200_v1 = vld [vmem:[%s2379_s1] sm:$0xff]  ;;  %vm269_vm1 = vcmask 31744   ;;  %v201_v3 = vld [vmem:[%s2379_s1 + $0x8] sm:$0xff]  ;;  %v202_v4 = vld [vmem:[%s2379_s1 + $0x10] sm:$0xff] }
  0x15   : > { %v203_v5 = vld [vmem:[%s2379_s1 + $0x18] sm:$0xff]  ;;  %v1013_v7 = vld [vmem:[%s2380_s2] sm:$0xff]  ;;  %v205_v9 = vld [vmem:[%s2379_s1 + $0x28] sm:$0xff]  ;;  %s186_s23 = sand.u32 1, %s1550_s13   ;;  %vm1187_vm2 = vcmask 1041408   ;;  %s1508_s11 = scalar_lea.hbm %s2381_s3, 8 }
  0x16   : > { %s191_s26 = scalar_select %p190_p11, %s1558_s15, 1  ;;  %v204_v8 = vld [vmem:[%s2379_s1 + $0x20] sm:$0xff]  ;;  %v206_v10 = vld [vmem:[%s2379_s1 + $0x30] sm:$0xff]  ;;  %v207_v11 = vld [vmem:[%s2379_s1 + $0x38] sm:$0xff] }
  0x17   : > { %v240_v12 = vld [vmem:[%s2379_s1 + $0x140] sm:$0xff]  ;;  %v241_v14 = vld [vmem:[%s2379_s1 + $0x148] sm:$0xff]  ;;  %v242_v16 = vld [vmem:[%s2379_s1 + $0x150] sm:$0xff] }
  0x18   : > { %s1429_s27 = sshll.u32 %s191_s26, 3  ;;  %v208_v13 = vld [vmem:[%s2379_s1 + $0x40] sm:$0xff]  ;;  %v209_v15 = vld [vmem:[%s2379_s1 + $0x48] sm:$0xff]  ;;  %v210_v17 = vld [vmem:[%s2379_s1 + $0x50] sm:$0xff]  ;;  %s1291_s26 = sshll.u32 %s186_s23, 2 }
  0x19   : > { %s197_s30 = scalar_lea.vmem %s2378_s0, %s1429_s27  ;;  %v243_v18 = vld [vmem:[%s2379_s1 + $0x158] sm:$0xff]  ;;  %v244_v20 = vld [vmem:[%s2379_s1 + $0x160] sm:$0xff]  ;;  %v245_v22 = vld [vmem:[%s2379_s1 + $0x168] sm:$0xff]  ;;  %s1430_s27 = sshll.u32 %s1558_s15, 2 }
  0x1a   : > { %v264_v0 = vld [vmem:[%s197_s30] sm:$0xff]  ;;  %v211_v19 = vld [vmem:[%s2379_s1 + $0x58] sm:$0xff]  ;;  %v213_v23 = vld [vmem:[%s2379_s1 + $0x68] sm:$0xff]  ;;  %s1205_s30 = scalar_lea.hbm %s2381_s3, %s1430_s27  ;;  %s188_s4 = scalar_lea.vmem [#allocation2], %s1291_s26 }
  0x1b   : > { %266 = vst [vmem:[#allocation1] ss:$2 sm:$0xff] %v264_v0  ;;  %v212_v21 = vld [vmem:[%s2379_s1 + $0x60] sm:$0xff]  ;;  %v246_v24 = vld [vmem:[%s2379_s1 + $0x170] sm:$0xff]  ;;  %v1756_v26 = vld [vmem:[%s2379_s1 + $0x138] sm:$0xff]  ;;  %s1207_s5 = sshll.u32 %s188_s4, 4  ;;  %s1208_s5 = int_to_ptr.vmem [resolvable:$true] %s1207_s5 }
  0x1c   : > { %v214_v25 = vld [vmem:[%s2379_s1 + $0x70] sm:$0xff]  ;;  %v247_v27 = vld [vmem:[%s2379_s1 + $0x178] sm:$0xff]  ;;  %v248_v29 = vld [vmem:[%s2379_s1 + $0x180] sm:$0xff]  ;;  %s1209_s6 = sshll.u32 %s1205_s30, 4  ;;  %s1192_s15 = scalar_lea.sflag [#allocation3], %s186_s23  ;;  %s1210_s6 = int_to_ptr.hbm [resolvable:$true] %s1209_s6 }
  0x1d   : > { %v215_v28 = vld [vmem:[%s2379_s1 + $0x78] sm:$0xff]  ;;  %v216_v31 = vld [vmem:[%s2379_s1 + $0x80] sm:$0xff]  ;;  %v249_v32 = vld [vmem:[%s2379_s1 + $0x188] sm:$0xff]  ;;  %s1502_s7 = sshra.s32 %s1210_s6, 4  ;;  %s1503_s7 = int_to_ptr.hbm [resolvable:$true] %s1502_s7 }
  0x1e   : > { %v217_v34 = vld [vmem:[%s2379_s1 + $0x88] sm:$0xff]  ;;  %v250_v35 = vld [vmem:[%s2379_s1 + $0x190] sm:$0xff]  ;;  %v1810_v38 = vld [vmem:[%s2379_s1 + $0x198] sm:$0xff]  ;;  %s1504_s8 = scalar_lea.hbm %s1503_s7, 4  ;;  %p1509_p1 = scmp.lt.s32.totalorder %s1503_s7, %s2381_s3 }
  0x1f   : > { %v218_v37 = vld [vmem:[%s2379_s1 + $0x90] sm:$0xff]  ;;  %v219_v40 = vld [vmem:[%s2379_s1 + $0x98] sm:$0xff]  ;;  %v1825_v41 = vld [vmem:[%s2379_s1 + $0x1a0] sm:$0xff]  ;;  %p1505_p12 = scmp.ne.s32.totalorder %s1503_s7, %s1504_s8  ;;  %p1510_p2 = scmp.lt.s32.totalorder %s1508_s11, %s1504_s8 }
  0x20   : > { %v220_v44 = vld [vmem:[%s2379_s1 + $0xa0] sm:$0xff]  ;;  %v1842_v45 = vld [vmem:[%s2379_s1 + $0x1a8] sm:$0xff]  ;;  %v1859_v49 = vld [vmem:[%s2379_s1 + $0x1b0] sm:$0xff] }
  0x21   : > { %v221_v48 = vld [vmem:[%s2379_s1 + $0xa8] sm:$0xff]  ;;  %v222_v52 = vld [vmem:[%s2379_s1 + $0xb0] sm:$0xff]  ;;  %v1876_v53 = vld [vmem:[%s2379_s1 + $0x1b8] sm:$0xff]  ;;  %p1506_p13 = pnand %p1505_p12, %p1628_p4  ;;  %p1511_p3 = por %p1510_p2, %p1509_p1 }
  0x22   : > { %v267_v2 = vld.sshfl [vmem:[#allocation1] sm:$0xff pattern:$0x75316420]  ;;  %v268_v6 = vld.sshfl [vmem:[#allocation1 + $0x8] sm:$0xff pattern:$0x75316420] }
  0x23   : > { %1294 = vmatpush.msk.msra.mxu0 %vm462_vm0, %v267_v2  ;;  %1431 = vmatpush.msk.msra.mxu2 %vm462_vm0, %v267_v2  ;;  %1015 = vst [vmem:[#allocation1] ss:$4 sm:$0xff] %v1013_v7  ;;  %v223_v56 = vld [vmem:[%s2379_s1 + $0xb8] sm:$0xff]  ;;  %v1893_v57 = vld [vmem:[%s2379_s1 + $0x1c0] sm:$0xff]  ;;  %v1912_v62 = vld [vmem:[%s2379_s1 + $0x1c8] sm:$0xff]  ;;  %p1507_p0 = pneg %p1506_p13 }
  0x24   : > { %1295 = vmatmul.msk.f32.vlgmr.msra.gmra.mxu0 %vm269_vm1, %v200_v1  ;;  %1359 = vmatpush.msk.msra.mxu1 %vm462_vm0, %v268_v6  ;;  %v224_v61 = vld [vmem:[%s2379_s1 + $0xc0] sm:$0xff]  ;;  %v225_v2 = vld [vmem:[%s2379_s1 + $0xc8] sm:$0xff]  ;;  %v226_v7 = vld [vmem:[%s2379_s1 + $0xd0] sm:$0xff] }
  0x25   : > { %1432 = vmatpush.msk.msra.mxu3 %vm462_vm0, %v268_v6  ;;  %1360 = vmatmul.msk.f32.vlgmr.msra.gmra.mxu1 %vm269_vm1, %v200_v1  ;;  %p1512_p5 = pnand %p1511_p3, %p1507_p0 }
  0x26   : > { %1335 = vmatmul.msk.f32.vlgmr.msra.gmra.mxu2 %vm269_vm1, %v240_v12  ;;  %1399 = vmatmul.msk.f32.vlgmr.msra.gmra.mxu3 %vm269_vm1, %v1756_v26 }
  0x2c   : > { %1296 = vmatmul.msk.f32.gmra.mxu0 %vm269_vm1, %v201_v3 }
  0x2d   : > { %1361 = vmatmul.msk.f32.gmra.mxu1 %vm269_vm1, %v201_v3  ;;  %v1931_v3 = vld [vmem:[%s2379_s1 + $0x1d0] sm:$0xff] }
  0x2e   : > { %1336 = vmatmul.msk.f32.gmra.mxu2 %vm269_vm1, %v241_v14  ;;  %1400 = vmatmul.msk.f32.gmra.mxu3 %vm269_vm1, %v240_v12  ;;  %v227_v12 = vld [vmem:[%s2379_s1 + $0xd8] sm:$0xff] }
  0x34   : > { %1297 = vmatmul.msk.f32.gmra.mxu0 %vm269_vm1, %v202_v4 }
  0x35   : > { %1362 = vmatmul.msk.f32.gmra.mxu1 %vm269_vm1, %v202_v4 }
  0x36   : > { %1337 = vmatmul.msk.f32.gmra.mxu2 %vm269_vm1, %v242_v16  ;;  %1401 = vmatmul.msk.f32.gmra.mxu3 %vm269_vm1, %v241_v14 }
  0x3c   : > { %1298 = vmatmul.msk.f32.gmra.mxu0 %vm269_vm1, %v203_v5 }
  0x3d   : > { %1363 = vmatmul.msk.f32.gmra.mxu1 %vm269_vm1, %v203_v5 }
  0x3e   : > { %1338 = vmatmul.msk.f32.gmra.mxu2 %vm269_vm1, %v243_v18  ;;  %1402 = vmatmul.msk.f32.gmra.mxu3 %vm269_vm1, %v242_v16 }
  0x44   : > { %1299 = vmatmul.msk.f32.gmra.mxu0 %vm269_vm1, %v204_v8 }
  0x45   : > { %1364 = vmatmul.msk.f32.gmra.mxu1 %vm269_vm1, %v204_v8  ;;  %v1951_v8 = vld [vmem:[%s2379_s1 + $0x1d8] sm:$0xff] }
  0x46   : > { %1339 = vmatmul.msk.f32.gmra.mxu2 %vm269_vm1, %v244_v20  ;;  %1403 = vmatmul.msk.f32.gmra.mxu3 %vm269_vm1, %v243_v18  ;;  %v1987_v18 = vld [vmem:[%s2379_s1 + $0x1e8] sm:$0xff] }
  0x4c   : > { %1300 = vmatmul.msk.f32.gmra.mxu0 %vm269_vm1, %v205_v9 }
  0x4d   : > { %1365 = vmatmul.msk.f32.gmra.mxu1 %vm269_vm1, %v205_v9 }
  0x4e   : > { %1340 = vmatmul.msk.f32.gmra.mxu2 %vm269_vm1, %v245_v22  ;;  %1404 = vmatmul.msk.f32.gmra.mxu3 %vm269_vm1, %v244_v20 }
  0x54   : > { %1301 = vmatmul.msk.f32.gmra.mxu0 %vm269_vm1, %v206_v10 }
  0x55   : > { %1366 = vmatmul.msk.f32.gmra.mxu1 %vm269_vm1, %v206_v10 }
  0x56   : > { %1341 = vmatmul.msk.f32.gmra.mxu2 %vm269_vm1, %v246_v24  ;;  %1405 = vmatmul.msk.f32.gmra.mxu3 %vm269_vm1, %v245_v22  ;;  %v229_v22 = vld [vmem:[%s2379_s1 + $0xe8] sm:$0xff] }
  0x5c   : > { %1302 = vmatmul.msk.f32.gmra.mxu0 %vm269_vm1, %v207_v11 }
  0x5d   : > { %1367 = vmatmul.msk.f32.gmra.mxu1 %vm269_vm1, %v207_v11 }
  0x5e   : > { %1342 = vmatmul.msk.f32.gmra.mxu2 %vm269_vm1, %v247_v27  ;;  %1406 = vmatmul.msk.f32.gmra.mxu3 %vm269_vm1, %v246_v24 }
  0x64   : > { %1303 = vmatmul.msk.f32.gmra.mxu0 %vm269_vm1, %v208_v13 }
  0x65   : > { %1368 = vmatmul.msk.f32.gmra.mxu1 %vm269_vm1, %v208_v13  ;;  %v1969_v13 = vld [vmem:[%s2379_s1 + $0x1e0] sm:$0xff] }
  0x66   : > { %1343 = vmatmul.msk.f32.gmra.mxu2 %vm269_vm1, %v248_v29  ;;  %1407 = vmatmul.msk.f32.gmra.mxu3 %vm269_vm1, %v247_v27 }
  0x6c   : > { %1304 = vmatmul.msk.f32.gmra.mxu0 %vm269_vm1, %v209_v15 }
  0x6d   : > { %1369 = vmatmul.msk.f32.gmra.mxu1 %vm269_vm1, %v209_v15 }
  0x6e   : > { %1344 = vmatmul.msk.f32.gmra.mxu2 %vm269_vm1, %v249_v32  ;;  %1408 = vmatmul.msk.f32.gmra.mxu3 %vm269_vm1, %v248_v29  ;;  %v2023_v29 = vld [vmem:[%s2379_s1 + $0x1f8] sm:$0xff] }
  0x74   : > { %1305 = vmatmul.msk.f32.gmra.mxu0 %vm269_vm1, %v210_v17 }
  0x75   : > { %1370 = vmatmul.msk.f32.gmra.mxu1 %vm269_vm1, %v210_v17  ;;  %v228_v17 = vld [vmem:[%s2379_s1 + $0xe0] sm:$0xff] }
  0x76   : > { %1345 = vmatmul.msk.f32.gmra.mxu2 %vm269_vm1, %v250_v35  ;;  %1409 = vmatmul.msk.f32.gmra.mxu3 %vm269_vm1, %v249_v32 }
  0x7c   : > { %1306 = vmatmul.msk.f32.gmra.mxu0 %vm269_vm1, %v211_v19 }
  0x7d   : > { %1371 = vmatmul.msk.f32.gmra.mxu1 %vm269_vm1, %v211_v19 }
  0x7e   : > { %1346 = vmatmul.msk.f32.gmra.mxu2 %vm269_vm1, %v1810_v38  ;;  %1410 = vmatmul.msk.f32.gmra.mxu3 %vm269_vm1, %v250_v35 }
  0x84   : > { %1307 = vmatmul.msk.f32.gmra.mxu0 %vm269_vm1, %v212_v21 }
  0x85   : > { %1372 = vmatmul.msk.f32.gmra.mxu1 %vm269_vm1, %v212_v21 }
  0x86   : > { %1347 = vmatmul.msk.f32.gmra.mxu2 %vm269_vm1, %v1825_v41  ;;  %1411 = vmatmul.msk.f32.gmra.mxu3 %vm269_vm1, %v1810_v38 }
  0x8c   : > { %1308 = vmatmul.msk.f32.gmra.mxu0 %vm269_vm1, %v213_v23 }
  0x8d   : > { %1373 = vmatmul.msk.f32.gmra.mxu1 %vm269_vm1, %v213_v23  ;;  %v2005_v23 = vld [vmem:[%s2379_s1 + $0x1f0] sm:$0xff] }
  0x8e   : > { %1348 = vmatmul.msk.f32.gmra.mxu2 %vm269_vm1, %v1842_v45  ;;  %1412 = vmatmul.msk.f32.gmra.mxu3 %vm269_vm1, %v1825_v41 }
  0x94   : > { %1309 = vmatmul.msk.f32.gmra.mxu0 %vm269_vm1, %v214_v25 }
  0x95   : > { %1374 = vmatmul.msk.f32.gmra.mxu1 %vm269_vm1, %v214_v25 }
  0x96   : > { %1349 = vmatmul.msk.f32.gmra.mxu2 %vm269_vm1, %v1859_v49  ;;  %1413 = vmatmul.msk.f32.gmra.mxu3 %vm269_vm1, %v1842_v45 }
  0x9c   : > { %1310 = vmatmul.msk.f32.gmra.mxu0 %vm269_vm1, %v215_v28 }
  0x9d   : > { %1375 = vmatmul.msk.f32.gmra.mxu1 %vm269_vm1, %v215_v28  ;;  %v230_v28 = vld [vmem:[%s2379_s1 + $0xf0] sm:$0xff] }
  0x9e   : > { %1350 = vmatmul.msk.f32.gmra.mxu2 %vm269_vm1, %v1876_v53  ;;  %1414 = vmatmul.msk.f32.gmra.mxu3 %vm269_vm1, %v1859_v49 }
  0xa1   : > { %v1776_v30 = vpop.f32.mrf.mxu0 }
  0xa2   : > { %v1827_v42 = vpop.f32.mrf.mxu1 }
  0xa3   : > { %2384 = vst [vmem:[#allocation5_spill] sm:$0xff] %v1827_v42 }
  0xa4   : > { %1311 = vmatmul.msk.f32.gmra.mxu0 %vm269_vm1, %v216_v31 }
  0xa5   : > { %1376 = vmatmul.msk.f32.gmra.mxu1 %vm269_vm1, %v216_v31 }
  0xa6   : > { %1351 = vmatmul.msk.f32.gmra.mxu2 %vm269_vm1, %v1893_v57  ;;  %1415 = vmatmul.msk.f32.gmra.mxu3 %vm269_vm1, %v1876_v53  ;;  %v232_v53 = vld [vmem:[%s2379_s1 + $0x100] sm:$0xff] }
  0xa9   : > { %v1788_v33 = vpop.f32.mrf.mxu0  ;;  %v1900_v59 = vpop.f32.mrf.mxu2 }
  0xaa   : > { %v1844_v46 = vpop.f32.mrf.mxu1  ;;  %v2027_v31 = vpop.f32.mrf.mxu3 }
  0xab   : > { %2385 = vst [vmem:[#allocation6_spill] sm:$0xff] %v1844_v46 }
  0xac   : > { %1312 = vmatmul.msk.f32.gmra.mxu0 %vm269_vm1, %v217_v34  ;;  %2386 = vst [vmem:[#allocation7_spill] sm:$0xff] %v2027_v31 }
  0xad   : > { %1377 = vmatmul.msk.f32.gmra.mxu1 %vm269_vm1, %v217_v34 }
  0xae   : > { %1352 = vmatmul.msk.f32.gmra.mxu2 %vm269_vm1, %v1912_v62  ;;  %1416 = vmatmul.msk.f32.gmra.mxu3 %vm269_vm1, %v1893_v57 }
  0xb1   : > { %v1800_v36 = vpop.f32.mrf.mxu0  ;;  %v1919_v0 = vpop.f32.mrf.mxu2 }
  0xb2   : > { %v1861_v50 = vpop.f32.mrf.mxu1  ;;  %v2040_v41 = vpop.f32.mrf.mxu3 }
  0xb3   : > { %2387 = vst [vmem:[#allocation8_spill] sm:$0xff] %v2040_v41 }
  0xb4   : > { %1313 = vmatmul.msk.f32.gmra.mxu0 %vm269_vm1, %v218_v37 }
  0xb5   : > { %1378 = vmatmul.msk.f32.gmra.mxu1 %vm269_vm1, %v218_v37  ;;  %v231_v37 = vld [vmem:[%s2379_s1 + $0xf8] sm:$0xff] }
  0xb6   : > { %1353 = vmatmul.msk.f32.gmra.mxu2 %vm269_vm1, %v1931_v3  ;;  %1417 = vmatmul.msk.f32.gmra.mxu3 %vm269_vm1, %v1912_v62 }
  0xb9   : > { %v1815_v39 = vpop.f32.mrf.mxu0  ;;  %v1938_v5 = vpop.f32.mrf.mxu2 }
  0xba   : > { %v1878_v54 = vpop.f32.mrf.mxu1 }
  0xbc   : > { %1314 = vmatmul.msk.f32.gmra.mxu0 %vm269_vm1, %v219_v40 }
  0xbd   : > { %1379 = vmatmul.msk.f32.gmra.mxu1 %vm269_vm1, %v219_v40 }
  0xbe   : > { %1354 = vmatmul.msk.f32.gmra.mxu2 %vm269_vm1, %v1951_v8  ;;  %1418 = vmatmul.msk.f32.gmra.mxu3 %vm269_vm1, %v1931_v3  ;;  %v234_v3 = vld [vmem:[%s2379_s1 + $0x110] sm:$0xff] }
  0xc1   : > { %v1832_v43 = vpop.f32.mrf.mxu0  ;;  %v1958_v10 = vpop.f32.mrf.mxu2 }
  0xc2   : > { %v1895_v58 = vpop.f32.mrf.mxu1 }
  0xc4   : > { %1315 = vmatmul.msk.f32.gmra.mxu0 %vm269_vm1, %v220_v44 }
  0xc5   : > { %1380 = vmatmul.msk.f32.gmra.mxu1 %vm269_vm1, %v220_v44 }
  0xc6   : > { %1355 = vmatmul.msk.f32.gmra.mxu2 %vm269_vm1, %v1969_v13  ;;  %1419 = vmatmul.msk.f32.gmra.mxu3 %vm269_vm1, %v1951_v8 }
  0xc9   : > { %v1849_v47 = vpop.f32.mrf.mxu0  ;;  %v1976_v15 = vpop.f32.mrf.mxu2 }
  0xca   : > { %v1914_v63 = vpop.f32.mrf.mxu1 }
  0xcc   : > { %1316 = vmatmul.msk.f32.gmra.mxu0 %vm269_vm1, %v221_v48 }
  0xcd   : > { %1381 = vmatmul.msk.f32.gmra.mxu1 %vm269_vm1, %v221_v48 }
  0xce   : > { %1356 = vmatmul.msk.f32.gmra.mxu2 %vm269_vm1, %v1987_v18  ;;  %1420 = vmatmul.msk.f32.gmra.mxu3 %vm269_vm1, %v1969_v13 }
  0xd1   : > { %v1866_v51 = vpop.f32.mrf.mxu0  ;;  %v1994_v20 = vpop.f32.mrf.mxu2 }
  0xd2   : > { %v1933_v4 = vpop.f32.mrf.mxu1 }
  0xd4   : > { %1317 = vmatmul.msk.f32.gmra.mxu0 %vm269_vm1, %v222_v52 }
  0xd5   : > { %1382 = vmatmul.msk.f32.gmra.mxu1 %vm269_vm1, %v222_v52 }
  0xd6   : > { %1357 = vmatmul.msk.f32.gmra.mxu2 %vm269_vm1, %v2005_v23  ;;  %1421 = vmatmul.msk.f32.gmra.mxu3 %vm269_vm1, %v1987_v18 }
  0xd9   : > { %v1883_v55 = vpop.f32.mrf.mxu0  ;;  %v2012_v25 = vpop.f32.mrf.mxu2 }
  0xda   : > { %v1953_v9 = vpop.f32.mrf.mxu1  ;;  %v977_v8 = vmax.f32 %v2012_v25, 0.0 }
  0xdc   : > { %1318 = vmatmul.msk.f32.gmra.mxu0 %vm269_vm1, %v223_v56 }
  0xdd   : > { %1383 = vmatmul.msk.f32.gmra.mxu1 %vm269_vm1, %v223_v56 }
  0xde   : > { %1358 = vmatmul.msk.f32.gmra.mxu2 %vm269_vm1, %v2023_v29  ;;  %1422 = vmatmul.msk.f32.gmra.mxu3 %vm269_vm1, %v2005_v23 }
  0xe1   : > { %v1902_v60 = vpop.f32.mrf.mxu0  ;;  %v2032_v34 = vpop.f32.mrf.mxu2 }
  0xe2   : > { %v1973_v14 = vpop.f32.mrf.mxu1 }
  0xe4   : > { %1319 = vmatmul.msk.f32.gmra.mxu0 %vm269_vm1, %v224_v61 }
  0xe5   : > { %1384 = vmatmul.msk.f32.gmra.mxu1 %vm269_vm1, %v224_v61  ;;  %v2056_v61 = vpop.f32.mrf.mxu3 }
  0xe6   : > { %2388 = vst [vmem:[#allocation9_spill] sm:$0xff] %v2056_v61  ;;  %1423 = vmatmul.msk.f32.gmra.mxu3 %vm269_vm1, %v2023_v29 }
  0xe9   : > { %v1921_v1 = vpop.f32.mrf.mxu0  ;;  %v2045_v49 = vpop.f32.mrf.mxu2 }
  0xea   : > { %v1991_v19 = vpop.f32.mrf.mxu1 }
  0xec   : > { %1320 = vmatmul.msk.f32.gmra.mxu0 %vm269_vm1, %v225_v2 }
  0xed   : > { %1385 = vmatmul.msk.f32.gmra.mxu1 %vm269_vm1, %v225_v2  ;;  %v903_v2 = vmax.f32 %v1921_v1, 0.0  ;;  %v897_v1 = vmax.f32 %v1866_v51, 0.0  ;;  %v891_v51 = vmax.f32 %v1815_v39, 0.0  ;;  %v979_v39 = vmax.f32 %v2032_v34, 0.0 }
  0xf1   : > { %v1940_v6 = vpop.f32.mrf.mxu0 }
  0xf2   : > { %v2009_v24 = vpop.f32.mrf.mxu1  ;;  %v905_v57 = vmax.f32 %v1940_v6, 0.0  ;;  %v233_v6 = vld [vmem:[%s2379_s1 + $0x108] sm:$0xff] }
  0xf4   : > { %1321 = vmatmul.msk.f32.gmra.mxu0 %vm269_vm1, %v226_v7 }
  0xf5   : > { %1386 = vmatmul.msk.f32.gmra.mxu1 %vm269_vm1, %v226_v7 }
  0xf9   : > { %v517_v11 = vpop.f32.mrf.mxu0 }
  0xfa   : > { %v2029_v32 = vpop.f32.mrf.mxu1  ;;  %v907_v56 = vmax.f32 %v517_v11, 0.0  ;;  %v901_v11 = vmax.f32 %v1902_v60, 0.0  ;;  %v2075_v60 = vpop.f32.mrf.mxu3 }
  0xfb   : > { %2389 = vst [vmem:[#allocation10_spill] sm:$0xff] %v2075_v60 }
  0xfc   : > { %1322 = vmatmul.msk.f32.gmra.mxu0 %vm269_vm1, %v227_v12 }
  0xfd   : > { %1387 = vmatmul.msk.f32.gmra.mxu1 %vm269_vm1, %v227_v12  ;;  %v2063_v12 = vpop.f32.mrf.mxu2 }
 0x101   : > { %v520_v16 = vpop.f32.mrf.mxu0 }
 0x102   : > { %v2042_v45 = vpop.f32.mrf.mxu1  ;;  %v909_v48 = vmax.f32 %v520_v16, 0.0  ;;  %v899_v16 = vmax.f32 %v1883_v55, 0.0  ;;  %v893_v55 = vmax.f32 %v1832_v43, 0.0  ;;  %v2094_v43 = vpop.f32.mrf.mxu3 }
 0x103   : > { %2390 = vst [vmem:[#allocation11_spill] sm:$0xff] %v2094_v43 }
 0x104   : > { %1323 = vmatmul.msk.f32.gmra.mxu0 %vm269_vm1, %v228_v17 }
 0x105   : > { %1388 = vmatmul.msk.f32.gmra.mxu1 %vm269_vm1, %v228_v17  ;;  %v895_v17 = vmax.f32 %v1849_v47, 0.0  ;;  %v889_v47 = vmax.f32 %v1800_v36, 0.0  ;;  %v235_v36 = vld [vmem:[%s2379_s1 + $0x118] sm:$0xff] }
 0x109   : > { %v523_v21 = vpop.f32.mrf.mxu0 }
 0x10a   : > { %v911_v44 = vmax.f32 %v523_v21, 0.0  ;;  %v2059_v7 = vpop.f32.mrf.mxu1 }
 0x10c   : > { %1324 = vmatmul.msk.f32.gmra.mxu0 %vm269_vm1, %v229_v22 }
 0x10d   : > { %1389 = vmatmul.msk.f32.gmra.mxu1 %vm269_vm1, %v229_v22 }
 0x111   : > { %v526_v27 = vpop.f32.mrf.mxu0 }
 0x112   : > { %v913_v40 = vmax.f32 %v526_v27, 0.0  ;;  %v2078_v21 = vpop.f32.mrf.mxu1  ;;  %v2088_v27 = vpop.f32.mrf.mxu2 }
 0x114   : > { %1325 = vmatmul.msk.f32.gmra.mxu0 %vm269_vm1, %v230_v28 }
 0x115   : > { %1390 = vmatmul.msk.f32.gmra.mxu1 %vm269_vm1, %v230_v28  ;;  %v887_v28 = vmax.f32 %v1788_v33, 0.0  ;;  %v975_v33 = vmax.f32 %v1994_v20, 0.0  ;;  %v236_v20 = vld [vmem:[%s2379_s1 + $0x120] sm:$0xff] }
 0x119   : > { %v529_v35 = vpop.f32.mrf.mxu0 }
 0x11a   : > { %v915_v38 = vmax.f32 %v529_v35, 0.0  ;;  %v2097_v35 = vpop.f32.mrf.mxu1  ;;  %v2112_v34 = vpop.f32.mrf.mxu2 }
 0x11c   : > { %1326 = vmatmul.msk.f32.gmra.mxu0 %vm269_vm1, %v231_v37  ;;  %1024 = vmatpush.msrb.mxu2 %v915_v38  ;;  %v885_v38 = vmax.f32 %v1776_v30, 0.0  ;;  %v2114_v30 = vpop.f32.mrf.mxu3 }
 0x11d   : > { %1391 = vmatmul.msk.f32.gmra.mxu1 %vm269_vm1, %v231_v37  ;;  %2391 = vst [vmem:[#allocation12_spill] sm:$0xff] %v2114_v30  ;;  %v973_v37 = vmax.f32 %v1976_v15, 0.0  ;;  %v967_v15 = vmax.f32 %v1919_v0, 0.0 }
 0x11e   : > { %1025 = vmatpush.msrb.mxu2 %v913_v40 }
 0x120   : > { %1026 = vmatpush.msrb.mxu2 %v911_v44  ;;  %v971_v44 = vmax.f32 %v1958_v10, 0.0 }
 0x121   : > { %v2047_v52 = vpop.f32.mrf.mxu0 }
 0x122   : > { %1027 = vmatpush.msrb.mxu2 %v909_v48  ;;  %v2116_v25 = vpop.f32.mrf.mxu1  ;;  %v969_v48 = vmax.f32 %v1938_v5, 0.0  ;;  %v2133_v10 = vpop.f32.mrf.mxu2  ;;  %v237_v5 = vld [vmem:[%s2379_s1 + $0x128] sm:$0xff] }
 0x124   : > { %1327 = vmatmul.msk.f32.gmra.mxu0 %vm269_vm1, %v232_v53  ;;  %1028 = vmatpush.msrb.mxu2 %v907_v56 }
 0x125   : > { %1392 = vmatmul.msk.f32.gmra.mxu1 %vm269_vm1, %v232_v53  ;;  %v2131_v53 = vpop.f32.mrf.mxu3 }
 0x126   : > { %1029 = vmatpush.msrb.mxu2 %v905_v57  ;;  %2392 = vst [vmem:[#allocation13_spill] sm:$0xff] %v2131_v53  ;;  %v965_v57 = vmax.f32 %v1900_v59, 0.0 }
 0x128   : > { %1030 = vmatpush.msrb.mxu2 %v903_v2 }
 0x129   : > { %v2065_v62 = vpop.f32.mrf.mxu0 }
 0x12a   : > { %1031 = vmatpush.msrb.mxu2 %v901_v11  ;;  %v2135_v56 = vpop.f32.mrf.mxu1  ;;  %v2152_v59 = vpop.f32.mrf.mxu2 }
 0x12c   : > { %1328 = vmatmul.msk.f32.gmra.mxu0 %vm269_vm1, %v233_v6  ;;  %1032 = vmatpush.msrb.mxu2 %v899_v16 }
 0x12d   : > { %1393 = vmatmul.msk.f32.gmra.mxu1 %vm269_vm1, %v233_v6  ;;  %v2147_v0 = vpop.f32.mrf.mxu3  ;;  %v238_v6 = vld [vmem:[%s2379_s1 + $0x130] sm:$0xff] }
 0x12e   : > { %1033 = vmatpush.msrb.mxu2 %v897_v1  ;;  %2393 = vst [vmem:[#allocation14_spill] sm:$0xff] %v2147_v0 }
 0x130   : > { %1034 = vmatpush.msrb.mxu2 %v895_v17 }
 0x131   : > { %v2082_v22 = vpop.f32.mrf.mxu0 }
 0x132   : > { %1035 = vmatpush.msrb.mxu2 %v893_v55  ;;  %v2150_v2 = vpop.f32.mrf.mxu1  ;;  %v2167_v17 = vpop.f32.mrf.mxu2 }
 0x134   : > { %1329 = vmatmul.msk.f32.gmra.mxu0 %vm269_vm1, %v234_v3  ;;  %1036 = vmatpush.msrb.mxu2 %v891_v51 }
 0x135   : > { %1394 = vmatmul.msk.f32.gmra.mxu1 %vm269_vm1, %v234_v3  ;;  %v2162_v23 = vpop.f32.mrf.mxu3 }
 0x136   : > { %1037 = vmatpush.msrb.mxu2 %v889_v47  ;;  %2394 = vst [vmem:[#allocation15_spill] sm:$0xff] %v2162_v23 }
 0x138   : > { %1038 = vmatpush.msrb.mxu2 %v887_v28 }
 0x139   : > { %v2103_v40 = vpop.f32.mrf.mxu0 }
 0x13a   : > { %1039 = vmatpush.msrb.mxu2 %v885_v38  ;;  %v2165_v1 = vpop.f32.mrf.mxu1  ;;  %v2176_v51 = vpop.f32.mrf.mxu2 }
 0x13c   : > { %1064 = vmatpush.msra.mxu2 %v979_v39  ;;  %1330 = vmatmul.msk.f32.gmra.mxu0 %vm269_vm1, %v235_v36 }
 0x13d   : > { %1395 = vmatmul.msk.f32.gmra.mxu1 %vm269_vm1, %v235_v36  ;;  %v2171_v55 = vpop.f32.mrf.mxu3 }
 0x13e   : > { %1065 = vmatpush.msra.mxu2 %v977_v8  ;;  %2395 = vst [vmem:[#allocation16_spill] sm:$0xff] %v2171_v55 }
 0x140   : > { %1066 = vmatpush.msra.mxu2 %v975_v33 }
 0x141   : > { %v2121_v13 = vpop.f32.mrf.mxu0 }
 0x142   : > { %1067 = vmatpush.msra.mxu2 %v973_v37  ;;  %v2174_v29 = vpop.f32.mrf.mxu1  ;;  %v2183_v38 = vpop.f32.mrf.mxu2 }
 0x144   : > { %1068 = vmatpush.msra.mxu2 %v971_v44  ;;  %1331 = vmatmul.msk.f32.gmra.mxu0 %vm269_vm1, %v236_v20 }
 0x145   : > { %1396 = vmatmul.msk.f32.gmra.mxu1 %vm269_vm1, %v236_v20  ;;  %v2178_v47 = vpop.f32.mrf.mxu3 }
 0x146   : > { %1069 = vmatpush.msra.mxu2 %v969_v48  ;;  %2396 = vst [vmem:[#allocation17_spill] sm:$0xff] %v2178_v47 }
 0x148   : > { %1070 = vmatpush.msra.mxu2 %v967_v15 }
 0x149   : > { %v2139_v18 = vpop.f32.mrf.mxu0 }
 0x14a   : > { %1071 = vmatpush.msra.mxu2 %v965_v57  ;;  %v2181_v39 = vpop.f32.mrf.mxu1  ;;  %v2190_v33 = vpop.f32.mrf.mxu2 }
 0x14c   : > { %1332 = vmatmul.msk.f32.gmra.mxu0 %vm269_vm1, %v237_v5 }
 0x14d   : > { %1397 = vmatmul.msk.f32.gmra.mxu1 %vm269_vm1, %v237_v5 }
 0x151   : > { %v2154_v11 = vpop.f32.mrf.mxu0 }
 0x152   : > { %v2188_v36 = vpop.f32.mrf.mxu1  ;;  %v2196_v15 = vpop.f32.mrf.mxu2 }
 0x154   : > { %1333 = vmatmul.msk.f32.gmra.mxu0 %vm269_vm1, %v238_v6 }
 0x155   : > { %1398 = vmatmul.msk.f32.gmra.mxu1 %vm269_vm1, %v238_v6 }
 0x159   : > { %v553_v16 = vpop.f32.mrf.mxu0 }
 0x15a   : > { %v2194_v48 = vpop.f32.mrf.mxu1  ;;  %v2202_v6 = vpop.f32.mrf.mxu2 }
 0x15c   : > { %1334 = vmatmul.msk.f32.gmra.mxu0 %vm269_vm1, %v1756_v26  ;;  %v2186_v26 = vpop.f32.mrf.mxu3 }
 0x15d   : > { %2397 = vst [vmem:[#allocation18_spill] sm:$0xff] %v2186_v26 }
 0x161   : > { %v556_v3 = vpop.f32.mrf.mxu0 }
 0x162   : > { %v2200_v31 = vpop.f32.mrf.mxu1  ;;  %v664_v47 = vpop.f32.mrf.mxu2 }
 0x164   : > { %v2192_v44 = vpop.f32.mrf.mxu3 }
 0x165   : > { %2398 = vst [vmem:[#allocation19_spill] sm:$0xff] %v2192_v44 }
 0x169   : > { %v559_v28 = vpop.f32.mrf.mxu0 }
 0x16a   : > { %v2206_v61 = vpop.f32.mrf.mxu1  ;;  %v667_v0 = vpop.f32.mrf.mxu2 }
 0x16c   : > { %v2198_v57 = vpop.f32.mrf.mxu3 }
 0x16d   : > { %2399 = vst [vmem:[#allocation20_spill] sm:$0xff] %v2198_v57 }
 0x171   : > { %v562_v8 = vpop.f32.mrf.mxu0 }
 0x172   : > { %v2210_v57 = vpop.f32.mrf.mxu1  ;;  %v937_v46 = vmax.f32 %v562_v8, 0.0 }
 0x174   : > { %v2204_v41 = vpop.f32.mrf.mxu3 }
 0x175   : > { %2400 = vst [vmem:[#allocation21_spill] sm:$0xff] %v2204_v41 }
 0x179   : > { %v565_v37 = vpop.f32.mrf.mxu0 }
 0x17a   : > { %v939_v41 = vmax.f32 %v565_v37, 0.0 }
 0x17c   : > { %v2208_v60 = vpop.f32.mrf.mxu3 }
 0x17d   : > { %2401 = vst [vmem:[#allocation22_spill] sm:$0xff] %v2208_v60  ;;  %v935_v60 = vmax.f32 %v559_v28, 0.0  ;;  %v919_v28 = vmax.f32 %v2065_v62, 0.0  ;;  %v1005_v62 = vmax.f32 %v664_v47, 0.0 }
 0x181   : > { %v568_v20 = vpop.f32.mrf.mxu0 }
 0x182   : > { %v941_v53 = vmax.f32 %v568_v20, 0.0  ;;  %v929_v20 = vmax.f32 %v2154_v11, 0.0 }
 0x184   : > { %v2214_v42 = vpop.f32.mrf.mxu3 }
 0x189   : > { %v571_v5 = vpop.f32.mrf.mxu0 }
 0x18a   : > { %v943_v30 = vmax.f32 %v571_v5, 0.0 }
 0x18c   : > { %v2221_v37 = vpop.f32.mrf.mxu3 }
 0x191   : > { %v574_v55 = vpop.f32.mrf.mxu0 }
 0x192   : > { %v945_v44 = vmax.f32 %v574_v55, 0.0  ;;  %v2218_v55 = vpop.f32.mrf.mxu1 }
 0x194   : > { %v2232_v8 = vpop.f32.mrf.mxu3 }
 0x199   : > { %v577_v26 = vpop.f32.mrf.mxu0 }
 0x19a   : > { %v947_v43 = vmax.f32 %v577_v26, 0.0  ;;  %v933_v26 = vmax.f32 %v556_v3, 0.0  ;;  %v2228_v3 = vpop.f32.mrf.mxu1 }
 0x19c   : > { %1044 = vmatpush.msrb.mxu3 %v947_v43 }
 0x19e   : > { %1045 = vmatpush.msrb.mxu3 %v945_v44  ;;  %v931_v44 = vmax.f32 %v553_v16, 0.0  ;;  %v921_v16 = vmax.f32 %v2082_v22, 0.0 }
 0x1a0   : > { %1046 = vmatpush.msrb.mxu3 %v943_v30  ;;  %v670_v30 = vpop.f32.mrf.mxu2 }
 0x1a1   : > { %v2212_v23 = vpop.f32.mrf.mxu0  ;;  %v1009_v5 = vmax.f32 %v670_v30, 0.0  ;;  %v1001_v30 = vmax.f32 %v2196_v15, 0.0  ;;  %v993_v15 = vmax.f32 %v2167_v17, 0.0 }
 0x1a2   : > { %1047 = vmatpush.msrb.mxu3 %v941_v53  ;;  %v927_v53 = vmax.f32 %v2139_v18, 0.0  ;;  %v780_v22 = vpop.f32.mrf.mxu1 }
 0x1a4   : > { %1048 = vmatpush.msrb.mxu3 %v939_v41  ;;  %v925_v41 = vmax.f32 %v2121_v13, 0.0  ;;  %v917_v13 = vmax.f32 %v2047_v52, 0.0 }
 0x1a6   : > { %1049 = vmatpush.msrb.mxu3 %v937_v46 }
 0x1a8   : > { %1050 = vmatpush.msrb.mxu3 %v935_v60  ;;  %v923_v60 = vmax.f32 %v2103_v40, 0.0  ;;  %v673_v11 = vpop.f32.mrf.mxu2  ;;  %v2237_v40 = vld.sshfl [vmem:[#allocation1 + $0x8] sm:$0xff pattern:$0x73625140] }
 0x1a9   : > { %v2216_v43 = vpop.f32.mrf.mxu0  ;;  %v1011_v18 = vmax.f32 %v673_v11, 0.0 }
 0x1aa   : > { %1051 = vmatpush.msrb.mxu3 %v933_v26  ;;  %v783_v47 = vpop.f32.mrf.mxu1 }
 0x1ac   : > { %1052 = vmatpush.msrb.mxu3 %v931_v44  ;;  %v1007_v44 = vmax.f32 %v667_v0, 0.0  ;;  %v999_v0 = vmax.f32 %v2190_v33, 0.0  ;;  %v989_v33 = vmax.f32 %v2133_v10, 0.0  ;;  %v2261_v10 = vld.sshfl [vmem:[#allocation1 + $0x18] sm:$0xff pattern:$0x73625140] }
 0x1ae   : > { %1053 = vmatpush.msrb.mxu3 %v929_v20  ;;  %v2240_v20 = vpop.f32.mrf.mxu3 }
 0x1b0   : > { %1054 = vmatpush.msrb.mxu3 %v927_v53  ;;  %v1003_v53 = vmax.f32 %v2202_v6, 0.0 }
 0x1b1   : > { %v2225_v46 = vpop.f32.mrf.mxu0 }
 0x1b2   : > { %1055 = vmatpush.msrb.mxu3 %v925_v41  ;;  %v2244_v41 = vld.sshfl [vmem:[#allocation1] sm:$0xff pattern:$0x73625140] }
 0x1b3   : > { %1040 = vmatmul.f32.vlgmr.msrb.gmra.mxu2 %v2244_v41 }
 0x1b4   : > { %1056 = vmatpush.msrb.mxu3 %v923_v60  ;;  %v997_v60 = vmax.f32 %v2183_v38, 0.0 }
 0x1b6   : > { %1057 = vmatpush.msrb.mxu3 %v921_v16  ;;  %v995_v16 = vmax.f32 %v2176_v51, 0.0  ;;  %v2250_v6 = vpop.f32.mrf.mxu3  ;;  %v985_v51 = vmax.f32 %v2088_v27, 0.0  ;;  %v944_v27 = vmax.f32 %v780_v22, 0.0 }
 0x1b8   : > { %1058 = vmatpush.msrb.mxu3 %v919_v28  ;;  %v991_v28 = vmax.f32 %v2152_v59, 0.0  ;;  %v981_v59 = vmax.f32 %v2045_v49, 0.0 }
 0x1b9   : > { %v2235_v26 = vpop.f32.mrf.mxu0 }
 0x1ba   : > { %1059 = vmatpush.msrb.mxu3 %v917_v13  ;;  %v786_v13 = vpop.f32.mrf.mxu1 }
 0x1bb   : > { %1060 = vmatmul.f32.vlgmr.msrb.gmra.mxu3 %v2237_v40  ;;  %v948_v17 = vmax.f32 %v786_v13, 0.0 }
 0x1bc   : > { %1084 = vmatpush.msra.mxu3 %v1011_v18  ;;  %v987_v18 = vmax.f32 %v2112_v34, 0.0 }
 0x1be   : > { %1085 = vmatpush.msra.mxu3 %v1009_v5  ;;  %v2257_v5 = vpop.f32.mrf.mxu3 }
 0x1c0   : > { %1086 = vmatpush.msra.mxu3 %v1007_v44  ;;  %v983_v44 = vmax.f32 %v2063_v12, 0.0  ;;  %v942_v12 = vmax.f32 %v2228_v3, 0.0  ;;  %v936_v3 = vmax.f32 %v2206_v61, 0.0  ;;  %v2281_v61 = vld.sshfl [vmem:[#allocation1 + $0x10] sm:$0xff pattern:$0x73625140] }
 0x1c1   : > { %v592_v52 = vpop.f32.mrf.mxu0 }
 0x1c2   : > { %1087 = vmatpush.msra.mxu3 %v1005_v62  ;;  %v946_v62 = vmax.f32 %v783_v47, 0.0  ;;  %v2263_v34 = vpop.f32.mrf.mxu1  ;;  %v940_v47 = vmax.f32 %v2218_v55, 0.0  ;;  %v951_v55 = vmax.f32 %v2216_v43, 0.0  ;;  %v928_v43 = vmax.f32 %v2181_v39, 0.0 }
 0x1c3   : > { %v922_v39 = vmax.f32 %v2150_v2, 0.0 }
 0x1c4   : > { %1088 = vmatpush.msra.mxu3 %v1003_v53 }
 0x1c6   : > { %1089 = vmatpush.msra.mxu3 %v1001_v30  ;;  %v2267_v49 = vpop.f32.mrf.mxu3 }
 0x1c8   : > { %1090 = vmatpush.msra.mxu3 %v999_v0 }
 0x1c9   : > { %v595_v11 = vpop.f32.mrf.mxu0 }
 0x1ca   : > { %1091 = vmatpush.msra.mxu3 %v997_v60  ;;  %v959_v60 = vmax.f32 %v595_v11, 0.0  ;;  %v2272_v22 = vpop.f32.mrf.mxu1  ;;  %v953_v11 = vmax.f32 %v2225_v46, 0.0  ;;  %v930_v46 = vmax.f32 %v2188_v36, 0.0  ;;  %v910_v36 = vmax.f32 %v2042_v45, 0.0 }
 0x1cc   : > { %1092 = vmatpush.msra.mxu3 %v995_v16  ;;  %v957_v16 = vmax.f32 %v592_v52, 0.0 }
 0x1ce   : > { %1093 = vmatpush.msra.mxu3 %v993_v15  ;;  %v938_v15 = vmax.f32 %v2210_v57, 0.0  ;;  %v932_v57 = vmax.f32 %v2194_v48, 0.0  ;;  %v879_v52 = vpop.f32.mrf.mxu3 }
 0x1d0   : > { %1094 = vmatpush.msra.mxu3 %v991_v28  ;;  %v955_v28 = vmax.f32 %v2235_v26, 0.0  ;;  %v949_v26 = vmax.f32 %v2212_v23, 0.0  ;;  %v912_v23 = vmax.f32 %v2059_v7, 0.0  ;;  %v906_v7 = vmax.f32 %v2009_v24, 0.0 }
 0x1d1   : > { %v598_v38 = vpop.f32.mrf.mxu0  ;;  %v900_v24 = vmax.f32 %v1953_v9, 0.0  ;;  %v1004_v9 = vmax.f32 %v2250_v6, 0.0  ;;  %v2403_v6 = vld [vmem:[#allocation5_spill] sm:$0xff] }
 0x1d2   : > { %1095 = vmatpush.msra.mxu3 %v989_v33  ;;  %v961_v0 = vmax.f32 %v598_v38, 0.0  ;;  %v934_v33 = vmax.f32 %v2200_v31, 0.0  ;;  %v914_v31 = vmax.f32 %v2078_v21, 0.0  ;;  %v2288_v48 = vpop.f32.mrf.mxu1  ;;  %v924_v38 = vmax.f32 %v2165_v1, 0.0 }
 0x1d3   : > { %v908_v21 = vmax.f32 %v2029_v32, 0.0  ;;  %v918_v1 = vmax.f32 %v2116_v25, 0.0  ;;  %v902_v32 = vmax.f32 %v1973_v14, 0.0  ;;  %v896_v25 = vmax.f32 %v1914_v63, 0.0 }
 0x1d4   : > { %1096 = vmatpush.msra.mxu3 %v987_v18  ;;  %v916_v18 = vmax.f32 %v2097_v35, 0.0  ;;  %v926_v35 = vmax.f32 %v2174_v29, 0.0  ;;  %v904_v29 = vmax.f32 %v1991_v19, 0.0  ;;  %v898_v19 = vmax.f32 %v1933_v4, 0.0 }
 0x1d5   : > { %v1006_v14 = vmax.f32 %v2257_v5, 0.0  ;;  %v1000_v63 = vmax.f32 %v2232_v8, 0.0  ;;  %v2402_v5 = vld [vmem:[#allocation6_spill] sm:$0xff] }
 0x1d6   : > { %1097 = vmatpush.msra.mxu3 %v985_v51  ;;  %v882_v13 = vpop.f32.mrf.mxu3  ;;  %v920_v51 = vmax.f32 %v2135_v56, 0.0  ;;  %v894_v56 = vmax.f32 %v1895_v58, 0.0  ;;  %v998_v58 = vmax.f32 %v2221_v37, 0.0  ;;  %v2406_v8 = vld [vmem:[#allocation14_spill] sm:$0xff] }
 0x1d7   : > { %v1012_v45 = vmax.f32 %v882_v13, 0.0  ;;  %v2419_v13 = vld [vmem:[#allocation7_spill] sm:$0xff] }
 0x1d8   : > { %1098 = vmatpush.msra.mxu3 %v983_v44  ;;  %v1010_v44 = vmax.f32 %v879_v52, 0.0 }
 0x1d9   : > { %v601_v53 = vpop.f32.mrf.mxu0 }
 0x1da   : > { %1099 = vmatpush.msra.mxu3 %v981_v59  ;;  %v963_v30 = vmax.f32 %v601_v53, 0.0  ;;  %v2300_v2 = vpop.f32.mrf.mxu1  ;;  %v892_v59 = vmax.f32 %v1878_v54, 0.0  ;;  %v888_v53 = vmax.f32 %v2402_v5, 0.0  ;;  %v996_v54 = vmax.f32 %v2214_v42, 0.0  ;;  %v2409_v42 = vld [vmem:[#allocation20_spill] sm:$0xff] }
 0x1db   : > { %1100 = vmatmul.f32.vlgmr.msra.gmra.mxu3 %v2261_v10 }
 0x1dc   : > { %1124 = vmatpush.msrb.mxu3 %v948_v17  ;;  %1072 = vmatpush.msra.mxu2 %v963_v30  ;;  %v1008_v17 = vmax.f32 %v2267_v49, 0.0  ;;  %v886_v30 = vmax.f32 %v2403_v6, 0.0 }
 0x1de   : > { %1125 = vmatpush.msrb.mxu3 %v946_v62  ;;  %1073 = vmatpush.msra.mxu2 %v961_v0  ;;  %v890_v62 = vmax.f32 %v1861_v50, 0.0  ;;  %v2405_v0 = vld [vmem:[#allocation22_spill] sm:$0xff] }
 0x1df   : > { %v994_v50 = vmax.f32 %v2405_v0, 0.0 }
 0x1e0   : > { %1126 = vmatpush.msrb.mxu3 %v944_v27  ;;  %1074 = vmatpush.msra.mxu2 %v959_v60  ;;  %v2407_v60 = vld [vmem:[#allocation21_spill] sm:$0xff] }
 0x1e1   : > { %v992_v49 = vmax.f32 %v2407_v60, 0.0 }
 0x1e2   : > { %1127 = vmatpush.msrb.mxu3 %v942_v12  ;;  %1075 = vmatpush.msra.mxu2 %v957_v16  ;;  %v801_v4 = vpop.f32.mrf.mxu1  ;;  %v978_v12 = vmax.f32 %v2406_v8, 0.0 }
 0x1e4   : > { %1128 = vmatpush.msrb.mxu3 %v940_v47  ;;  %1076 = vmatpush.msra.mxu2 %v955_v28  ;;  %v2408_v47 = vld [vmem:[#allocation13_spill] sm:$0xff]  ;;  %v2410_v28 = vld [vmem:[#allocation12_spill] sm:$0xff] }
 0x1e5   : > { %v976_v16 = vmax.f32 %v2408_v47, 0.0 }
 0x1e6   : > { %1129 = vmatpush.msrb.mxu3 %v938_v15  ;;  %1077 = vmatpush.msra.mxu2 %v953_v11  ;;  %v990_v15 = vmax.f32 %v2409_v42, 0.0  ;;  %v2411_v11 = vld [vmem:[#allocation19_spill] sm:$0xff] }
 0x1e8   : > { %1130 = vmatpush.msrb.mxu3 %v936_v3  ;;  %1078 = vmatpush.msra.mxu2 %v951_v55  ;;  %v974_v3 = vmax.f32 %v2410_v28, 0.0  ;;  %v2412_v55 = vld [vmem:[#allocation11_spill] sm:$0xff] }
 0x1ea   : > { %1131 = vmatpush.msrb.mxu3 %v934_v33  ;;  %1079 = vmatpush.msra.mxu2 %v949_v26  ;;  %v804_v37 = vpop.f32.mrf.mxu1  ;;  %v988_v33 = vmax.f32 %v2411_v11, 0.0  ;;  %v2413_v26 = vld [vmem:[#allocation18_spill] sm:$0xff] }
 0x1eb   : > { %1080 = vmatmul.f32.vlgmr.msra.gmra.mxu2 %v2281_v61  ;;  %v986_v52 = vmax.f32 %v2413_v26, 0.0 }
 0x1ec   : > { %1132 = vmatpush.msrb.mxu3 %v932_v57  ;;  %1104 = vmatpush.msrb.mxu2 %v916_v18  ;;  %v972_v57 = vmax.f32 %v2412_v55, 0.0  ;;  %v2414_v18 = vld [vmem:[#allocation10_spill] sm:$0xff] }
 0x1ee   : > { %1133 = vmatpush.msrb.mxu3 %v930_v46  ;;  %1105 = vmatpush.msrb.mxu2 %v914_v31  ;;  %v2415_v46 = vld [vmem:[#allocation17_spill] sm:$0xff] }
 0x1ef   : > { %v984_v31 = vmax.f32 %v2415_v46, 0.0 }
 0x1f0   : > { %1134 = vmatpush.msrb.mxu3 %v928_v43  ;;  %1106 = vmatpush.msrb.mxu2 %v912_v23  ;;  %v2416_v43 = vld [vmem:[#allocation9_spill] sm:$0xff] }
 0x1f1   : > { %v968_v23 = vmax.f32 %v2416_v43, 0.0 }
 0x1f2   : > { %1135 = vmatpush.msrb.mxu3 %v926_v35  ;;  %1107 = vmatpush.msrb.mxu2 %v910_v36  ;;  %v2417_v35 = vld [vmem:[#allocation16_spill] sm:$0xff] }
 0x1f3   : > { %v982_v36 = vmax.f32 %v2417_v35, 0.0 }
 0x1f4   : > { %1136 = vmatpush.msrb.mxu3 %v924_v38  ;;  %1108 = vmatpush.msrb.mxu2 %v908_v21  ;;  %v807_v38 = vpop.f32.mrf.mxu1  ;;  %v2418_v21 = vld [vmem:[#allocation8_spill] sm:$0xff] }
 0x1f6   : > { %1137 = vmatpush.msrb.mxu3 %v922_v39  ;;  %1109 = vmatpush.msrb.mxu2 %v906_v7  ;;  %v966_v39 = vmax.f32 %v2418_v21, 0.0  ;;  %v964_v7 = vmax.f32 %v2419_v13, 0.0 }
 0x1f8   : > { %1138 = vmatpush.msrb.mxu3 %v920_v51  ;;  %1110 = vmatpush.msrb.mxu2 %v904_v29  ;;  %v962_v51 = vmax.f32 %v807_v38, 0.0  ;;  %v960_v29 = vmax.f32 %v804_v37, 0.0 }
 0x1fa   : > { %1139 = vmatpush.msrb.mxu3 %v918_v1  ;;  %1111 = vmatpush.msrb.mxu2 %v902_v32  ;;  %v956_v1 = vmax.f32 %v2300_v2, 0.0  ;;  %v954_v32 = vmax.f32 %v2288_v48, 0.0 }
 0x1fb   : > { %1140 = vmatmul.f32.vlgmr.msrb.gmra.mxu3 %v2237_v40  ;;  %v1002_v40 = vmax.f32 %v2240_v20, 0.0  ;;  %v2404_v20 = vld [vmem:[#allocation15_spill] sm:$0xff] }
 0x1fc   : > { %1164 = vmatpush.msra.mxu3 %v1012_v45  ;;  %1112 = vmatpush.msrb.mxu2 %v900_v24  ;;  %v980_v27 = vmax.f32 %v2404_v20, 0.0  ;;  %v958_v45 = vmax.f32 %v801_v4, 0.0  ;;  %v950_v24 = vmax.f32 %v2263_v34, 0.0 }
 0x1fe   : > { %1165 = vmatpush.msra.mxu3 %v1010_v44  ;;  %1113 = vmatpush.msrb.mxu2 %v898_v19  ;;  %v952_v44 = vmax.f32 %v2272_v22, 0.0 }
 0x200   : > { %1166 = vmatpush.msra.mxu3 %v1008_v17  ;;  %1114 = vmatpush.msrb.mxu2 %v896_v25 }
 0x202   : > { %1167 = vmatpush.msra.mxu3 %v1006_v14  ;;  %1115 = vmatpush.msrb.mxu2 %v894_v56 }
 0x204   : > { %1168 = vmatpush.msra.mxu3 %v1004_v9  ;;  %1116 = vmatpush.msrb.mxu2 %v892_v59 }
 0x206   : > { %1169 = vmatpush.msra.mxu3 %v1002_v40  ;;  %1117 = vmatpush.msrb.mxu2 %v890_v62 }
 0x208   : > { %1170 = vmatpush.msra.mxu3 %v1000_v63  ;;  %1118 = vmatpush.msrb.mxu2 %v888_v53 }
 0x20a   : > { %1171 = vmatpush.msra.mxu3 %v998_v58  ;;  %1119 = vmatpush.msrb.mxu2 %v886_v30 }
 0x20b   : > { %1120 = vmatmul.f32.vlgmr.msrb.gmra.mxu2 %v2244_v41  ;;  %v970_v41 = vmax.f32 %v2414_v18, 0.0 }
 0x20c   : > { %1172 = vmatpush.msra.mxu3 %v996_v54  ;;  %1144 = vmatpush.msra.mxu2 %v980_v27 }
 0x20e   : > { %1173 = vmatpush.msra.mxu3 %v994_v50  ;;  %1145 = vmatpush.msra.mxu2 %v978_v12 }
 0x210   : > { %1174 = vmatpush.msra.mxu3 %v992_v49  ;;  %1146 = vmatpush.msra.mxu2 %v976_v16 }
 0x212   : > { %1175 = vmatpush.msra.mxu3 %v990_v15  ;;  %1147 = vmatpush.msra.mxu2 %v974_v3 }
 0x214   : > { %1176 = vmatpush.msra.mxu3 %v988_v33  ;;  %1148 = vmatpush.msra.mxu2 %v972_v57 }
 0x216   : > { %1177 = vmatpush.msra.mxu3 %v986_v52  ;;  %1149 = vmatpush.msra.mxu2 %v970_v41 }
 0x218   : > { %1178 = vmatpush.msra.mxu3 %v984_v31  ;;  %1150 = vmatpush.msra.mxu2 %v968_v23 }
 0x21a   : > { %1179 = vmatpush.msra.mxu3 %v982_v36  ;;  %1151 = vmatpush.msra.mxu2 %v966_v39 }
 0x21b   : > { %1180 = vmatmul.f32.vlgmr.msra.gmra.mxu3 %v2261_v10 }
 0x21c   : > { %1152 = vmatpush.msra.mxu2 %v964_v7 }
 0x21e   : > { %1153 = vmatpush.msra.mxu2 %v962_v51 }
 0x220   : > { %1154 = vmatpush.msra.mxu2 %v960_v29 }
 0x222   : > { %1155 = vmatpush.msra.mxu2 %v958_v45 }
 0x224   : > { %1156 = vmatpush.msra.mxu2 %v956_v1 }
 0x226   : > { %1157 = vmatpush.msra.mxu2 %v954_v32 }
 0x228   : > { %1158 = vmatpush.msra.mxu2 %v952_v44 }
 0x22a   : > { %1159 = vmatpush.msra.mxu2 %v950_v24 }
 0x22b   : > { %1160 = vmatmul.f32.vlgmr.msra.gmra.mxu2 %v2281_v61 }
 0x236   : > { %v1041_v10 = vpop.f32.mrf.mxu2 }
 0x23e   : > { %v1061_v17 = vpop.f32.mrf.mxu3 }
 0x23f   : > { %v1062_v56 = vadd.f32 %v1061_v17, %v1041_v10 }
 0x25e   : > { %v1101_v25 = vpop.f32.mrf.mxu3 }
 0x26e   : > { %v1081_v19 = vpop.f32.mrf.mxu2 }
 0x26f   : > { %v1082_v34 = vadd.f32 %v1081_v19, %v1062_v56 }
 0x271   : > { %v1102_v40 = vadd.f32 %v1101_v25, %v1082_v34 }
 0x27e   : > { %v1141_v14 = vpop.f32.mrf.mxu3 }
 0x28e   : > { %v1121_v2 = vpop.f32.mrf.mxu2 }
 0x28f   : > { %v1142_v48 = vadd.f32 %v1141_v14, %v1121_v2 }
 0x29e   : > { %v1181_v22 = vpop.f32.mrf.mxu3 }
 0x2ae   : > { %v1161_v9 = vpop.f32.mrf.mxu2 }
 0x2af   : > { %v1162_v59 = vadd.f32 %v1161_v9, %v1142_v48 }
 0x2b1   : > { %v1182_v61 = vadd.f32 %v1181_v22, %v1162_v59 }
 0x2b3   : > { %v1186_v4 = vrot.slane %v1182_v61, 6 }
 0x2b5   : > { %v1188_v62 = vsel %vm1187_vm2, %v1102_v40, %v1186_v4 }
 0x2b6   : > { %1190 = vst [vmem:[%s188_s4] sm:$0xf] %v1188_v62 }
 0x2b7   : > { %1515 = shalt.err (!%p1512_p5)
}
 0x2b8   : > { %1433 = dma.vmem_to_hbm [thread:$0]  (%p1628_p4), %s1208_s5, 64, %s1210_s6, %s1192_s15  }
 0x2b9 PF: > { %p1439_p6 = scmp.ge.s32.totalorder %s1566_s17, 2  ;;  %s1221_s21 = sand.u32 1, %s1546_s12  }
 0x2ba   : > { %s1222_s23 = scalar_lea.sflag [#allocation3], %s1221_s21 }
 0x2bb   : > { %p1436_p7 = pnand %p1439_p6, %p1635_p8 }
 0x2bd   : > { %p1437_p9 = pneg %p1436_p7 }
 0x2bf   : > { %1541 = dma.done.wait (%p1437_p9), %s1222_s23, 64  }
 0x2c0   : > { %1543 = vsyncadd (%p1437_p9), %s1222_s23, 4294967232  ;;  %s16_s17 = sadd.s32 1, %s1566_s17   ;;  %s2420_s12 = smov %s1550_s13 }
 0x2c1   : > { %p13_p10 = scmp.ge.s32.totalorder %s16_s17, 4   ;;  %s2421_s13 = smov %s1554_s14 }
 0x2c2   : > { %s2422_s14 = smov %s1641_s25  ;;  %s2423_s15 = smov %s1562_s16 }
 0x2c3   : > { %s2424_s16 = smov %s2426_s20  ;;  %15 = sbr.rel (!%p13_p10) target bundleno = 4 (0x4), region = 67 }
 0x2c8   :  { %1228 = vsyncpa [#allocation3], 1 }
 0x2c9   :  { %1230 = vsyncpa [#allocation3 + $0x1], 1 }

</bundles_post_ra>
